<compile_context>
chip_gen: v6e
topology: v6e:2x2x1
jax: 0.10.0
libtpu: 0.0.40
codegen_flags: <defaults>
</compile_context>

<pallas_src>
import functools

import jax
import jax.numpy as jnp
from jax.experimental import pallas as pl
from jax.experimental.pallas import tpu as pltpu


LANE = 128   # lane width (last-dim alignment)
SUBLANE = 8  # sublane width (second-to-last-dim alignment)


def _round_up(x, m):
    return ((x + m - 1) // m) * m


# --------------------------------------------------------------------------- #
# Kernel
# --------------------------------------------------------------------------- #
def _mlp_kernel(x_ref, w1_ref, w2_ref, beff_ref, o_ref):
    # fc1: x @ W1       (bf16 operands, f32 MXU accumulate; b1 folded into b_eff)
    h = jnp.dot(x_ref[...], w1_ref[...], preferred_element_type=jnp.float32)
    # dropout(p=0) == identity
    # fc2: h @ W2 + b_eff
    out = jnp.dot(h.astype(w2_ref.dtype), w2_ref[...],
                  preferred_element_type=jnp.float32)
    o_ref[...] = (out + beff_ref[...]).astype(o_ref.dtype)


# --------------------------------------------------------------------------- #
# One-time parameter preparation (padding + bf16 cast + bias fold)
# --------------------------------------------------------------------------- #
def prepare_params(w1, b1, w2, b2):
    """Pad / cast weights once.  w1:[in,hid], b1:[hid], w2:[hid,out], b2:[out]."""
    in_dim, hid_dim = w1.shape
    out_dim = w2.shape[1]
    K = _round_up(in_dim, LANE)
    H = _round_up(hid_dim, LANE)
    N = _round_up(out_dim, LANE)

    bf16, f32 = jnp.bfloat16, jnp.float32
    w1_p = jnp.zeros((K, H), bf16).at[:in_dim, :hid_dim].set(w1.astype(bf16))
    w2_p = jnp.zeros((H, N), bf16).at[:hid_dim, :out_dim].set(w2.astype(bf16))
    # Fold the first bias (exact for p=0 dropout, no activation): kept in f32.
    b_eff = b1.astype(f32) @ w2.astype(f32) + b2.astype(f32)
    beff_p = jnp.zeros((1, N), f32).at[0, :out_dim].set(b_eff)
    return w1_p, w2_p, beff_p, (in_dim, hid_dim, out_dim)


# --------------------------------------------------------------------------- #
# VMEM limit: size to the real footprint, cap at 3/4 of physical VMEM
# --------------------------------------------------------------------------- #
def _pick_vmem_limit(need_bytes):
    cap = 64 << 20
    try:
        cap = int(pltpu.get_tpu_info().vmem_capacity_bytes) * 3 // 4
    except Exception:
        pass
    want = max(16 << 20, int(need_bytes * 3 // 2) + (2 << 20))
    return int(min(cap, want))


# --------------------------------------------------------------------------- #
# Forward pass
# --------------------------------------------------------------------------- #
@functools.partial(jax.jit, static_argnames=("out_dim", "max_tile_rows"))
def mlp_forward(x, w1_p, w2_p, beff_p, *, out_dim, max_tile_rows=512):
    """x: [B, input_dim] (any float dtype); padded params from prepare_params.

    Returns [B, out_dim] in x.dtype.
    """
    B, in_dim = x.shape
    K, H = w1_p.shape
    N = w2_p.shape[1]
    out_dtype = x.dtype
    bf16 = jnp.bfloat16

    # ---- batch tiling: minimal padding, >=2 tiles for megacore when B >= 256 ----
    B8 = _round_up(B, SUBLANE)
    n_tiles = max(1, pl.cdiv(B8, max_tile_rows))
    if n_tiles == 1 and B8 >= 256:
        n_tiles = 2                      # engage both v7x TensorCores
    tb = _round_up(pl.cdiv(B8, n_tiles), SUBLANE)
    B_pad = n_tiles * tb                 # pads at most n_tiles*7 extra rows

    # Only the activation is padded per call (zeros are exact; single bf16 pass).
    x_p = jnp.zeros((B_pad, K), bf16).at[:B, :in_dim].set(x.astype(bf16))

    out_itemsize = jnp.dtype(out_dtype).itemsize
    need = (2 * tb * K * 2                # x tile, double-buffered, bf16
            + 2 * tb * N * out_itemsize   # out tile, double-buffered
            + K * H * 2 + H * N * 2       # resident weights, single-buffered
            + N * 4)                      # resident bias
    vmem_limit = _pick_vmem_limit(need)

    out_p = pl.pallas_call(
        _mlp_kernel,
        out_shape=jax.ShapeDtypeStruct((B_pad, N), out_dtype),
        grid=(n_tiles,),
        in_specs=[
            pl.BlockSpec((tb, K), lambda i: (i, 0)),                 # x streams
            pl.BlockSpec((K, H), lambda i: (0, 0),
                         pipeline_mode=pl.Buffered(1)),              # W1 resident
            pl.BlockSpec((H, N), lambda i: (0, 0),
                         pipeline_mode=pl.Buffered(1)),              # W2 resident
            pl.BlockSpec((1, N), lambda i: (0, 0),
                         pipeline_mode=pl.Buffered(1)),              # b_eff resident
        ],
        out_specs=pl.BlockSpec((tb, N), lambda i: (i, 0)),
        compiler_params=pltpu.CompilerParams(
            dimension_semantics=("parallel",),
            vmem_limit_bytes=vmem_limit,
        ),
    )(x_p, w1_p, w2_p, beff_p)

    # Slice away padding outside the kernel; dtype already matches x.
    return out_p[:B, :out_dim]


# --------------------------------------------------------------------------- #
# Init (mimics nn.Linear's uniform(-1/sqrt(fan_in), +1/sqrt(fan_in)))
# --------------------------------------------------------------------------- #
def init_params(key, input_dim, output_dim, hidden_dim=10, dtype=jnp.float32):
    k1, k2, k3, k4 = jax.random.split(key, 4)
    bound1 = 1.0 / (input_dim ** 0.5)
    bound2 = 1.0 / (hidden_dim ** 0.5)
    # Stored as [in, out] (transpose of torch's [out, in]) for row-major matmul.
    w1 = jax.random.uniform(k1, (input_dim, hidden_dim), dtype, -bound1, bound1)
    b1 = jax.random.uniform(k2, (hidden_dim,), dtype, -bound1, bound1)
    w2 = jax.random.uniform(k3, (hidden_dim, output_dim), dtype, -bound2, bound2)
    b2 = jax.random.uniform(k4, (output_dim,), dtype, -bound2, bound2)
    return w1, b1, w2, b2


if __name__ == "__main__":
    # Small shapes consistent with the module: Model(input_dim=32, output_dim=16,
    # hidden_dim=10, p=0) applied to a batch of 8.
    B, input_dim, hidden_dim, output_dim = 8, 32, 10, 16

    key = jax.random.PRNGKey(0)
    kx, kp = jax.random.split(key)
    x = jax.random.normal(kx, (B, input_dim), jnp.float32)
    w1, b1, w2, b2 = init_params(kp, input_dim, output_dim, hidden_dim)

    # One-time parameter prep (padding / bf16 cast / bias fold).
    w1_p, w2_p, beff_p, (_, _, out_dim) = prepare_params(w1, b1, w2, b2)

    out = mlp_forward(x, w1_p, w2_p, beff_p, out_dim=out_dim)
    out = jax.block_until_ready(out)

    # Pure-JAX f32 reference (kernel uses bf16 operands with f32 accumulation).
    ref = (x @ w1 + b1) @ w2 + b2
    assert out.shape == (B, output_dim)
    assert out.dtype == x.dtype
    assert jnp.allclose(out, ref, atol=3e-2, rtol=3e-2), (
        float(jnp.max(jnp.abs(out - ref))))

    print("KERNEL_OK")
</pallas_src>

<mosaic_0001>
module attributes {stable_mosaic.version = 11 : i64} {
  func.func @_mlp_kernel(%arg0: i32, %arg1: memref<8x128xbf16, #tpu.memory_space<vmem>>, %arg2: memref<128x128xbf16, #tpu.memory_space<vmem>>, %arg3: memref<128x128xbf16, #tpu.memory_space<vmem>>, %arg4: memref<1x128xf32, #tpu.memory_space<vmem>>, %arg5: memref<8x128xf32, #tpu.memory_space<vmem>>) attributes {dimension_semantics = [#tpu.dimension_semantics<parallel>], iteration_bounds = array<i64: 1>, scalar_prefetch = 0 : i64, scratch_operands = 0 : i64, tpu.core_type = #tpu.core_type<tc>, window_params = [{transform_indices = @transform_0, window_bounds = array<i64: 8, 128>}, {pipeline_mode = #tpu.pipeline_mode<synchronous>, transform_indices = @transform_1, window_bounds = array<i64: 128, 128>}, {pipeline_mode = #tpu.pipeline_mode<synchronous>, transform_indices = @transform_2, window_bounds = array<i64: 128, 128>}, {pipeline_mode = #tpu.pipeline_mode<synchronous>, transform_indices = @transform_3, window_bounds = array<i64: 1, 128>}, {transform_indices = @transform_4, window_bounds = array<i64: 8, 128>}]} {
    %c0 = arith.constant 0 : index
    %c0_0 = arith.constant 0 : index
    %0 = vector.load %arg1[%c0, %c0_0] : memref<8x128xbf16, #tpu.memory_space<vmem>>, vector<8x128xbf16>
    %c0_1 = arith.constant 0 : index
    %c0_2 = arith.constant 0 : index
    %1 = vector.load %arg2[%c0_1, %c0_2] : memref<128x128xbf16, #tpu.memory_space<vmem>>, vector<128x128xbf16>
    %cst = arith.constant dense<0.000000e+00> : vector<8x128xf32>
    %2 = tpu.matmul %0, %1, %cst {dimension_numbers = #tpu.dot_dimension_numbers<[1], [0], [0], [1], [0, 0, 1, 1], [], []>} : vector<8x128xbf16>, vector<128x128xbf16>, vector<8x128xf32> -> vector<8x128xf32>
    %3 = arith.truncf %2 : vector<8x128xf32> to vector<8x128xbf16>
    %c0_3 = arith.constant 0 : index
    %c0_4 = arith.constant 0 : index
    %4 = vector.load %arg3[%c0_3, %c0_4] : memref<128x128xbf16, #tpu.memory_space<vmem>>, vector<128x128xbf16>
    %cst_5 = arith.constant dense<0.000000e+00> : vector<8x128xf32>
    %5 = tpu.matmul %3, %4, %cst_5 {dimension_numbers = #tpu.dot_dimension_numbers<[1], [0], [0], [1], [0, 0, 1, 1], [], []>} : vector<8x128xbf16>, vector<128x128xbf16>, vector<8x128xf32> -> vector<8x128xf32>
    %c0_6 = arith.constant 0 : index
    %c0_7 = arith.constant 0 : index
    %6 = vector.load %arg4[%c0_6, %c0_7] : memref<1x128xf32, #tpu.memory_space<vmem>>, vector<1x128xf32>
    %7 = vector.broadcast %6 : vector<1x128xf32> to vector<8x128xf32>
    %8 = arith.addf %5, %7 : vector<8x128xf32>
    %c0_8 = arith.constant 0 : index
    %c0_9 = arith.constant 0 : index
    %9 = vector.load %arg5[%c0_8, %c0_9] : memref<8x128xf32, #tpu.memory_space<vmem>>, vector<8x128xf32>
    tpu.vector_store %arg5[%c0_8, %c0_9], %8 {strides = array<i32>} : memref<8x128xf32, #tpu.memory_space<vmem>>, vector<8x128xf32>,
    return
  }
  func.func @transform_0(%arg0: i32) -> (i32, i32) {
    %c0_i32 = arith.constant 0 : i32
    %c0_i32_0 = arith.constant 0 : i32
    return %arg0, %c0_i32 : i32, i32
  }
  func.func @transform_1(%arg0: i32) -> (i32, i32) {
    %c0_i32 = arith.constant 0 : i32
    %c0_i32_0 = arith.constant 0 : i32
    %c0_i32_1 = arith.constant 0 : i32
    return %c0_i32, %c0_i32_0 : i32, i32
  }
  func.func @transform_2(%arg0: i32) -> (i32, i32) {
    %c0_i32 = arith.constant 0 : i32
    %c0_i32_0 = arith.constant 0 : i32
    %c0_i32_1 = arith.constant 0 : i32
    return %c0_i32, %c0_i32_0 : i32, i32
  }
  func.func @transform_3(%arg0: i32) -> (i32, i32) {
    %c0_i32 = arith.constant 0 : i32
    %c0_i32_0 = arith.constant 0 : i32
    %c0_i32_1 = arith.constant 0 : i32
    return %c0_i32, %c0_i32_0 : i32, i32
  }
  func.func @transform_4(%arg0: i32) -> (i32, i32) {
    %c0_i32 = arith.constant 0 : i32
    %c0_i32_0 = arith.constant 0 : i32
    return %arg0, %c0_i32 : i32, i32
  }
}

</mosaic_0001>

<bundles_post_ra>
// kernel: mlp_forward.1
= control target key start
LH: loop header
LB: loop body
LE: loop exit
PB: predicated region body
PF: predicated region fallthrough
CT: control target
= control target key end

     0   :  { %9 = vsyncpa [#allocation3], 0  ;;  %s492_s0 = inlined_call_operand.vmem [shape: bf16[8,128], index: 0, kind: input, shape index: {}]   ;;  %s493_s1 = inlined_call_operand.hbm [shape: bf16[128,128], index: 1, kind: input, shape index: {}]   ;;  %s494_s2 = inlined_call_operand.hbm [shape: bf16[128,128], index: 2, kind: input, shape index: {}]   ;;  %s495_s3 = inlined_call_operand.vmem [shape: f32[1,128], index: 3, kind: input, shape index: {}]   ;;  %s496_s4 = inlined_call_operand.hbm [shape: f32[8,128], index: 4, kind: output, shape index: {}]  }
   0x1   :  { %10 = vsyncpa [#allocation6], 0 }
   0x2   :  { %11 = vsyncpa [#allocation4], 0  ;;  %s445_s15 = smov [#allocation2]  }
   0x3   :  { %s19_s16 = sshll.u32 %s445_s15, 4  ;;  %s20_s16 = int_to_ptr.vmem [resolvable:$true] %s19_s16 }
   0x4   :  { %s387_s17 = scalar_lea.vmem %s20_s16, 1024  ;;  %p392_p1 = scmp.lt.s32.totalorder %s20_s16, %s20_s16 }
   0x5   :  { %p388_p0 = scmp.ne.s32.totalorder %s20_s16, %s387_s17  ;;  %p393_p2 = scmp.lt.s32.totalorder %s387_s17, %s387_s17 }
   0x7   :  { %p394_p3 = por %p393_p2, %p392_p1 }
   0x9   :  { %p395_p4 = pnand %p394_p3, %p388_p0 }
   0xb   :  { %398 = shalt.err (!%p395_p4)
}
   0xc   :  { %s446_s18 = smov 64   ;;  %s447_s19 = smov 4  }
   0xd   :  { %25 = dma.hbm_to_vmem [thread:$0]  %s493_s1, 1024, %s20_s16, [#allocation3], %s446_s18, %s446_s18, %s447_s19  }
   0xe   :  { %s448_s22 = smov [#allocation5]  }
   0xf   :  { %s31_s23 = sshll.u32 %s448_s22, 4  ;;  %s32_s23 = int_to_ptr.vmem [resolvable:$true] %s31_s23 }
  0x10   :  { %s407_s24 = scalar_lea.vmem %s32_s23, 1024  ;;  %p412_p6 = scmp.lt.s32.totalorder %s32_s23, %s32_s23 }
  0x11   :  { %p408_p5 = scmp.ne.s32.totalorder %s32_s23, %s407_s24  ;;  %p413_p7 = scmp.lt.s32.totalorder %s407_s24, %s407_s24 }
  0x13   :  { %p414_p8 = por %p413_p7, %p412_p6 }
  0x15   :  { %p415_p9 = pnand %p414_p8, %p408_p5 }
  0x17   :  { %418 = shalt.err (!%p415_p9)
}
  0x18   :  { %37 = dma.hbm_to_vmem [thread:$0]  %s494_s2, 1024, %s32_s23, [#allocation6], %s446_s18, %s446_s18, %s447_s19  }
  0x19   :  { %439 = dma.done.wait [#allocation3], 1024  }
  0x1a   :  { %440 = vsyncadd [#allocation3], 4294966272 }
  0x1b   :  { %441 = dma.done.wait [#allocation6], 1024  }
  0x1c   :  { %442 = vsyncadd [#allocation6], 4294966272  ;;  %v449_v0 = vmov 0.0   ;;  %vm450_vm0 = vmmov 0   ;;  %v363_v1 = vld [vmem:[#allocation2 + $0x38] sm:$0xff]   ;;  %v364_v2 = vld [vmem:[#allocation2 + $0x30] sm:$0xff]  }
  0x1d   :  { %316 = vmatprep.subr.bf16.mxu0 %v449_v0  ;;  %332 = vmatprep.mubr.msk.bf16.mxu0 %vm450_vm0, %v449_v0  ;;  %v365_v3 = vld [vmem:[#allocation2 + $0x28] sm:$0xff]   ;;  %v371_v4 = vld [vmem:[#allocation5 + $0x38] sm:$0xff]   ;;  %v366_v5 = vld [vmem:[#allocation2 + $0x20] sm:$0xff]   ;;  %s451_s29 = smov [#allocation7]  }
  0x1e   :  { %336 = vmatprep.subr.bf16.mxu1 %v449_v0  ;;  %352 = vmatprep.mubr.msk.bf16.mxu1 %vm450_vm0, %v449_v0  ;;  %v372_v6 = vld [vmem:[#allocation5 + $0x30] sm:$0xff]   ;;  %v367_v7 = vld [vmem:[#allocation2 + $0x18] sm:$0xff]   ;;  %v373_v8 = vld [vmem:[#allocation5 + $0x28] sm:$0xff]  }
  0x1f   :  { %317 = vmatpush3.bf16.msra.mxu0 %v363_v1  ;;  %337 = vmatpush3.bf16.msra.mxu1 %v371_v4  ;;  %v368_v9 = vld [vmem:[#allocation2 + $0x10] sm:$0xff]   ;;  %v374_v10 = vld [vmem:[#allocation5 + $0x20] sm:$0xff]   ;;  %v369_v11 = vld [vmem:[#allocation2 + $0x8] sm:$0xff]  }
  0x20   :  { %318 = vmatprep.subr.bf16.mxu0 %v449_v0  ;;  %338 = vmatprep.subr.bf16.mxu1 %v449_v0  ;;  %v375_v12 = vld [vmem:[#allocation5 + $0x18] sm:$0xff]   ;;  %v370_v13 = vld [vmem:[#allocation2] sm:$0xff]   ;;  %v376_v14 = vld [vmem:[#allocation5 + $0x10] sm:$0xff]  }
  0x21   :  { %v47_v15 = vld [vmem:[%s492_s0] sm:$0xf]  ;;  %v377_v16 = vld [vmem:[#allocation5 + $0x8] sm:$0xff]   ;;  %s271_s0 = sshll.u32 %s451_s29, 4  ;;  %s272_s0 = int_to_ptr.vmem [resolvable:$true] %s271_s0 }
  0x22   :  { %v378_v17 = vld [vmem:[#allocation5] sm:$0xff]   ;;  %s419_s30 = scalar_lea.vmem %s272_s0, 128  ;;  %p424_p11 = scmp.lt.s32.totalorder %s272_s0, %s272_s0 }
  0x23   :  { %319 = vmatpush3.bf16.msra.mxu0 %v364_v2  ;;  %339 = vmatpush3.bf16.msra.mxu1 %v372_v6  ;;  %v289_v23 = vld [vmem:[%s495_s3] ss:$0 sm:$0xff]  ;;  %p420_p10 = scmp.ne.s32.totalorder %s272_s0, %s419_s30  ;;  %p425_p12 = scmp.lt.s32.totalorder %s419_s30, %s419_s30 }
  0x24   :  { %320 = vmatprep.subr.bf16.mxu0 %v449_v0  ;;  %340 = vmatprep.subr.bf16.mxu1 %v449_v0 }
  0x25   :  { %p426_p13 = por %p425_p12, %p424_p11 }
  0x27   :  { %321 = vmatpush3.bf16.msra.mxu0 %v365_v3  ;;  %341 = vmatpush3.bf16.msra.mxu1 %v373_v8  ;;  %p427_p0 = pnand %p426_p13, %p420_p10 }
  0x28   :  { %322 = vmatprep.subr.bf16.mxu0 %v449_v0  ;;  %342 = vmatprep.subr.bf16.mxu1 %v449_v0 }
  0x2b   :  { %323 = vmatpush3.bf16.msra.mxu0 %v366_v5  ;;  %343 = vmatpush3.bf16.msra.mxu1 %v374_v10 }
  0x2c   :  { %324 = vmatprep.subr.bf16.mxu0 %v449_v0  ;;  %344 = vmatprep.subr.bf16.mxu1 %v449_v0 }
  0x2f   :  { %325 = vmatpush3.bf16.msra.mxu0 %v367_v7  ;;  %345 = vmatpush3.bf16.msra.mxu1 %v375_v12 }
  0x30   :  { %326 = vmatprep.subr.bf16.mxu0 %v449_v0  ;;  %346 = vmatprep.subr.bf16.mxu1 %v449_v0 }
  0x33   :  { %327 = vmatpush3.bf16.msra.mxu0 %v368_v9  ;;  %347 = vmatpush3.bf16.msra.mxu1 %v376_v14 }
  0x34   :  { %328 = vmatprep.subr.bf16.mxu0 %v449_v0  ;;  %348 = vmatprep.subr.bf16.mxu1 %v449_v0 }
  0x37   :  { %329 = vmatpush3.bf16.msra.mxu0 %v369_v11  ;;  %349 = vmatpush3.bf16.msra.mxu1 %v377_v16 }
  0x38   :  { %330 = vmatprep.subr.bf16.mxu0 %v449_v0  ;;  %350 = vmatprep.subr.bf16.mxu1 %v449_v0 }
  0x3b   :  { %331 = vmatpush3.bf16.msra.mxu0 %v370_v13  ;;  %351 = vmatpush3.bf16.msra.mxu1 %v378_v17 }
  0x3e   :  { %333 = vmatmul.mubr.bf16.vlgmr.msra.gmra.mxu0 %v47_v15 }
  0xfe   :  { %v146_v18 = vpop.f32.mrf.mxu0 }
  0xff   :  { %v152_v19 = vpack.c.bf16 %v146_v18, %v146_v18 }
 0x100   :  { %v334_v20 = vpop.f32.mrf.mxu0 }
 0x101   :  { %353 = vmatmul.mubr.bf16.vlgmr.msra.gmra.mxu1 %v152_v19 }
 0x102   :  { %v149_v21 = vpop.f32.mrf.mxu0 }
 0x104   :  { %v335_v22 = vpop.f32.mrf.mxu0 }
 0x1c1   :  { %v258_v24 = vpop.f32.mrf.mxu1 }
 0x1c2   :  { %v259_v25 = vadd.f32 %v289_v23, %v258_v24 }
 0x1c3   :  { %v354_v26 = vpop.f32.mrf.mxu1 }
 0x1c4   :  { %264 = vst [vmem:[#allocation7] sm:$0xff] %v259_v25 }
 0x1c5   :  { %v261_v27 = vpop.f32.mrf.mxu1 }
 0x1c6   :  { %430 = shalt.err (!%p427_p0)
}
 0x1c7   :  { %274 = dma.vmem_to_hbm [thread:$0]  %s272_s0, 128, %s496_s4, [#allocation4]   ;;  %v355_v28 = vpop.f32.mrf.mxu1 }
 0x1c8   :  { %443 = dma.done.wait [#allocation4], 128  }
 0x1c9   :  { %444 = vsyncadd [#allocation4], 4294967168 }
 0x1ca   :  { %278 = vsyncpa [#allocation3], 1 }
 0x1cb   :  { %279 = vsyncpa [#allocation6], 1 }
 0x1cc   :  { %280 = vsyncpa [#allocation4], 1 }

</bundles_post_ra>
